<compile_context>
chip_gen: v7x
topology: tpu7x:2x2x1
jax: 0.10.0
libtpu: 0.0.40
codegen_flags: <defaults>
</compile_context>

<pallas_src>
import math
import functools

import jax
import jax.numpy as jnp
from jax.experimental import pallas as pl
from jax.experimental.pallas import tpu as pltpu


# ----------------------------------------------------------------------------
# CIDL interpolation coefficients (host-side, baked into the kernel)
# ----------------------------------------------------------------------------
def _cidl_coeffs(os_factor: float):
    if os_factor >= 2:
        delta = os_factor - math.floor(os_factor) + 1
        epsilon = math.floor(os_factor) - 1
    else:
        delta = os_factor - 1
        epsilon = math.floor(os_factor)
    k0 = -(delta - 1) * (delta - 2) * (delta - 3) / 6
    k1 = delta * (delta - 2) * (delta - 3) / 2
    k2 = -delta * (delta - 1) * (delta - 3) / 2
    k3 = delta * (delta - 1) * (delta - 2) / 6
    return (float(k0), float(k1), float(k2), float(k3)), int(epsilon)


def _round_up(n: int, m: int) -> int:
    return ((n + m - 1) // m) * m


# ----------------------------------------------------------------------------
# Pallas kernel: one grid step == one CHUNK of time steps.
#
#   pre_ref  : (CHUNK, Bp, H)  hoisted input projection (+ summed biases)
#   whh_ref  : (H, H)          W_hh^T, resident (constant block index)
#   out_ref  : (CHUNK, Bp, H)  this chunk's states (written per step, read back
#                              for the interpolation taps)
#   carry_ref: (depth, Bp, H)  last `depth` states of the previous chunk
#
# Combined-history row r in [0, chunk+depth) holds the state at global step
# chunk_start - depth + r:  r < depth -> carry_ref[r], else out_ref[r - depth].
# At local step t the 4 taps are rows t..t+3 (row t <-> kernel[3], row t+3 <->
# kernel[0]); the new state is out_ref[t].  All tap rows are < current step,
# so they are always already written.
# ----------------------------------------------------------------------------
def _cidl_rnn_kernel(pre_ref, whh_ref, out_ref, carry_ref, *,
                     chunk, depth, kernel_coeffs):
    @pl.when(pl.program_id(0) == 0)
    def _():
        # Negative global steps read zeros (torch reads still-zero slots).
        carry_ref[...] = jnp.zeros_like(carry_ref)

    whh = whh_ref[...]                                    # (H, H) = W_hh^T

    # Static tap table; exact-zero coefficients dropped at trace time.
    taps = [(j, jnp.float32(kernel_coeffs[3 - j]))
            for j in range(4) if kernel_coeffs[3 - j] != 0.0]

    def hist_row(r):                                      # r in [0, chunk+depth)
        return carry_ref[r] if r < depth else out_ref[r - depth]

    # Serial recurrence over the chunk; fully static indices (Python unroll).
    for t in range(chunk):
        h_read = None
        for j, coef in taps:
            term = coef * hist_row(t + j)
            h_read = term if h_read is None else h_read + term
        pre = pre_ref[t] + jnp.dot(h_read, whh,
                                   preferred_element_type=jnp.float32)
        out_ref[t] = jnp.tanh(pre)

    # Carry the last `depth` states into the next chunk (chunk >= depth).
    carry_ref[...] = out_ref[pl.ds(chunk - depth, depth)]


# ----------------------------------------------------------------------------
# Wrapper: hoisted input GEMM, layout plumbing, padding, return convention.
# ----------------------------------------------------------------------------
def cidl_rnn_forward(x, w_ih, w_hh, b_ih, b_hh, os_factor=1.5, chunk=32):
    # TODO(synk): only the h=None, torch.nn.RNNCell path of CIDL_RNN.forward
    # is implemented (LSTMCell / explicit-h branch is out of scope here).
    B, T, _ = x.shape
    H = w_ih.shape[0]
    coeffs, epsilon = _cidl_coeffs(os_factor)
    if epsilon < 1:
        # TODO(synk): os_factor < 1 gives epsilon == 0 (a tap reads the
        # current, not-yet-written slot); degenerate config not supported.
        raise NotImplementedError("CIDL_RNN Pallas kernel requires epsilon >= 1")
    depth = epsilon + 3                                   # history window

    # Hoisted, time-parallel input projection with pre-summed biases
    # (one MXU-friendly XLA GEMM); kernel only runs the serial recurrence.
    x_tm = jnp.transpose(x, (1, 0, 2)).astype(jnp.float32)          # (T, B, I)
    pre_tm = jnp.einsum('tbi,hi->tbh', x_tm, w_ih.astype(jnp.float32),
                        precision='highest')
    pre_tm = pre_tm + (b_ih + b_hh).astype(jnp.float32)             # (T, B, H)

    Bp = _round_up(B, 8)                                  # sublane multiple
    chunk = max(depth, min(chunk, T))
    Tp = _round_up(T, chunk)
    pre_tm = jnp.pad(pre_tm, ((0, Tp - T), (0, Bp - B), (0, 0)))
    whh_t = jnp.transpose(w_hh).astype(jnp.float32)                 # W_hh^T

    kernel = functools.partial(_cidl_rnn_kernel, chunk=chunk, depth=depth,
                               kernel_coeffs=coeffs)

    states_tm = pl.pallas_call(
        kernel,
        out_shape=jax.ShapeDtypeStruct((Tp, Bp, H), jnp.float32),
        grid_spec=pltpu.PrefetchScalarGridSpec(
            num_scalar_prefetch=0,
            grid=(Tp // chunk,),
            in_specs=[
                pl.BlockSpec((chunk, Bp, H), lambda c: (c, 0, 0)),  # pre, streamed
                pl.BlockSpec((H, H), lambda c: (0, 0)),             # W_hh^T, resident
            ],
            out_specs=pl.BlockSpec((chunk, Bp, H), lambda c: (c, 0, 0)),
            scratch_shapes=[
                pltpu.VMEM((depth, Bp, H), jnp.float32),            # carry states
            ],
        ),
        compiler_params=pltpu.CompilerParams(
            dimension_semantics=("arbitrary",),           # time is sequential
            vmem_limit_bytes=32 * 1024 * 1024,
        ),
    )(pre_tm, whh_t)

    states = jnp.transpose(states_tm[:T, :B, :], (1, 0, 2))         # (B, T, H)

    # Return convention of CIDL_RNN.forward:
    #   (states[..., :hidden_size], vector_to_tuple(states))
    if H % 2 == 0:
        second = (states[..., :H // 2], states[..., H // 2:])
    else:
        second = states
    return states[..., :H], second


# ----------------------------------------------------------------------------
# Pure-JAX reference mirroring the torch loop (for correctness checking).
# ----------------------------------------------------------------------------
def cidl_rnn_reference(x, w_ih, w_hh, b_ih, b_hh, os_factor=1.5):
    B, T, _ = x.shape
    H = w_ih.shape[0]
    coeffs, epsilon = _cidl_coeffs(os_factor)
    states = jnp.zeros((B, T, H), jnp.float32)
    for i in range(T):
        h_read = jnp.zeros((B, H), jnp.float32)
        for k in range(4):
            # torch-style wraparound: negative indices hit still-zero slots
            h_read = h_read + coeffs[k] * states[:, (i - epsilon - k) % T, :]
        pre = (jnp.dot(x[:, i, :], w_ih.T, precision='highest')
               + b_ih + b_hh
               + jnp.dot(h_read, w_hh.T, precision='highest'))
        states = states.at[:, i, :].set(jnp.tanh(pre))
    if H % 2 == 0:
        second = (states[..., :H // 2], states[..., H // 2:])
    else:
        second = states
    return states[..., :H], second


if __name__ == "__main__":
    batch, seq, input_size, hidden = 4, 16, 8, 32
    os_factor = 1.5

    key = jax.random.PRNGKey(0)
    kx, kwih, kwhh, kbih, kbhh = jax.random.split(key, 5)

    bound = 1.0 / math.sqrt(hidden)   # torch.nn.RNNCell default init range
    x = jax.random.normal(kx, (batch, seq, input_size), dtype=jnp.float32)
    w_ih = jax.random.uniform(kwih, (hidden, input_size), jnp.float32, -bound, bound)
    w_hh = jax.random.uniform(kwhh, (hidden, hidden), jnp.float32, -bound, bound)
    b_ih = jax.random.uniform(kbih, (hidden,), jnp.float32, -bound, bound)
    b_hh = jax.random.uniform(kbhh, (hidden,), jnp.float32, -bound, bound)

    # chunk=8 with seq=16 -> 2 grid steps, exercising the cross-chunk carry.
    out, (h0, h1) = cidl_rnn_forward(x, w_ih, w_hh, b_ih, b_hh,
                                     os_factor=os_factor, chunk=8)
    jax.block_until_ready(out)

    ref_out, (ref_h0, ref_h1) = cidl_rnn_reference(
        x, w_ih, w_hh, b_ih, b_hh, os_factor)

    assert out.shape == (batch, seq, hidden)
    assert h0.shape == (batch, seq, hidden // 2)
    assert jnp.allclose(out, ref_out, atol=1e-4, rtol=1e-4)
    assert jnp.allclose(h0, ref_h0, atol=1e-4, rtol=1e-4)
    assert jnp.allclose(h1, ref_h1, atol=1e-4, rtol=1e-4)

    print("KERNEL_OK")
</pallas_src>

<mosaic_0001>
module attributes {stable_mosaic.version = 11 : i64} {
  func.func @_cidl_rnn_kernel(%arg0: i32, %arg1: memref<8x8x32xf32, #tpu.memory_space<vmem>>, %arg2: memref<32x32xf32, #tpu.memory_space<vmem>>, %arg3: memref<8x8x32xf32, #tpu.memory_space<vmem>>, %arg4: memref<4x8x32xf32, #tpu.memory_space<vmem>>) attributes {dimension_semantics = [#tpu.dimension_semantics<arbitrary>], iteration_bounds = array<i64: 2>, scalar_prefetch = 0 : i64, scratch_operands = 1 : i64, tpu.core_type = #tpu.core_type<tc>, window_params = [{transform_indices = @transform_0, window_bounds = array<i64: 8, 8, 32>}, {pipeline_mode = #tpu.pipeline_mode<synchronous>, transform_indices = @transform_1, window_bounds = array<i64: 32, 32>}, {transform_indices = @transform_2, window_bounds = array<i64: 8, 8, 32>}]} {
    %c0_i32 = arith.constant 0 : i32
    %0 = arith.cmpi eq, %arg0, %c0_i32 : i32
    %1 = arith.extui %0 : i1 to i32
    %c0_i32_0 = arith.constant 0 : i32
    %2 = arith.cmpi ne, %1, %c0_i32_0 : i32
    scf.if %2 {
      %cst_184 = arith.constant 0.000000e+00 : f32
      %222 = vector.broadcast %cst_184 : f32 to vector<4x8x32xf32>
      %c0_185 = arith.constant 0 : index
      %c0_186 = arith.constant 0 : index
      %c0_187 = arith.constant 0 : index
      %223 = vector.load %arg4[%c0_185, %c0_186, %c0_187] : memref<4x8x32xf32, #tpu.memory_space<vmem>>, vector<4x8x32xf32>
      tpu.vector_store %arg4[%c0_185, %c0_186, %c0_187], %222 {strides = array<i32>} : memref<4x8x32xf32, #tpu.memory_space<vmem>>, vector<4x8x32xf32>,
    } else {
    }
    %c0 = arith.constant 0 : index
    %c0_1 = arith.constant 0 : index
    %3 = vector.load %arg2[%c0, %c0_1] : memref<32x32xf32, #tpu.memory_space<vmem>>, vector<32x32xf32>
    %c0_2 = arith.constant 0 : index
    %c0_3 = arith.constant 0 : index
    %c0_4 = arith.constant 0 : index
    %4 = vector.load %arg4[%c0_2, %c0_3, %c0_4] : memref<4x8x32xf32, #tpu.memory_space<vmem>>, vector<1x8x32xf32>
    %5 = vector.shape_cast %4 : vector<1x8x32xf32> to vector<8x32xf32>
    %cst = arith.constant 6.250000e-02 : f32
    %6 = vector.broadcast %cst : f32 to vector<8x32xf32>
    %7 = arith.mulf %6, %5 : vector<8x32xf32>
    %c1 = arith.constant 1 : index
    %c0_5 = arith.constant 0 : index
    %c0_6 = arith.constant 0 : index
    %8 = vector.load %arg4[%c1, %c0_5, %c0_6] : memref<4x8x32xf32, #tpu.memory_space<vmem>>, vector<1x8x32xf32>
    %9 = vector.shape_cast %8 : vector<1x8x32xf32> to vector<8x32xf32>
    %cst_7 = arith.constant -3.125000e-01 : f32
    %10 = vector.broadcast %cst_7 : f32 to vector<8x32xf32>
    %11 = arith.mulf %10, %9 : vector<8x32xf32>
    %12 = arith.addf %7, %11 : vector<8x32xf32>
    %c2 = arith.constant 2 : index
    %c0_8 = arith.constant 0 : index
    %c0_9 = arith.constant 0 : index
    %13 = vector.load %arg4[%c2, %c0_8, %c0_9] : memref<4x8x32xf32, #tpu.memory_space<vmem>>, vector<1x8x32xf32>
    %14 = vector.shape_cast %13 : vector<1x8x32xf32> to vector<8x32xf32>
    %cst_10 = arith.constant 9.375000e-01 : f32
    %15 = vector.broadcast %cst_10 : f32 to vector<8x32xf32>
    %16 = arith.mulf %15, %14 : vector<8x32xf32>
    %17 = arith.addf %12, %16 : vector<8x32xf32>
    %c3 = arith.constant 3 : index
    %c0_11 = arith.constant 0 : index
    %c0_12 = arith.constant 0 : index
    %18 = vector.load %arg4[%c3, %c0_11, %c0_12] : memref<4x8x32xf32, #tpu.memory_space<vmem>>, vector<1x8x32xf32>
    %19 = vector.shape_cast %18 : vector<1x8x32xf32> to vector<8x32xf32>
    %cst_13 = arith.constant 3.125000e-01 : f32
    %20 = vector.broadcast %cst_13 : f32 to vector<8x32xf32>
    %21 = arith.mulf %20, %19 : vector<8x32xf32>
    %22 = arith.addf %17, %21 : vector<8x32xf32>
    %c0_14 = arith.constant 0 : index
    %c0_15 = arith.constant 0 : index
    %c0_16 = arith.constant 0 : index
    %23 = vector.load %arg1[%c0_14, %c0_15, %c0_16] : memref<8x8x32xf32, #tpu.memory_space<vmem>>, vector<1x8x32xf32>
    %24 = vector.shape_cast %23 : vector<1x8x32xf32> to vector<8x32xf32>
    %cst_17 = arith.constant dense<0.000000e+00> : vector<8x32xf32>
    %25 = tpu.matmul %22, %3, %cst_17 {dimension_numbers = #tpu.dot_dimension_numbers<[1], [0], [0], [1], [0, 0, 1, 1], [], []>} : vector<8x32xf32>, vector<32x32xf32>, vector<8x32xf32> -> vector<8x32xf32>
    %26 = arith.addf %24, %25 : vector<8x32xf32>
    %27 = math.tanh %26 : vector<8x32xf32>
    %c0_18 = arith.constant 0 : index
    %c0_19 = arith.constant 0 : index
    %c0_20 = arith.constant 0 : index
    %28 = vector.load %arg3[%c0_18, %c0_19, %c0_20] : memref<8x8x32xf32, #tpu.memory_space<vmem>>, vector<1x8x32xf32>
    %29 = vector.shape_cast %28 : vector<1x8x32xf32> to vector<8x32xf32>
    %30 = vector.shape_cast %27 : vector<8x32xf32> to vector<1x8x32xf32>
    tpu.vector_store %arg3[%c0_18, %c0_19, %c0_20], %30 {strides = array<i32>} : memref<8x8x32xf32, #tpu.memory_space<vmem>>, vector<1x8x32xf32>,
    %c1_21 = arith.constant 1 : index
    %c0_22 = arith.constant 0 : index
    %c0_23 = arith.constant 0 : index
    %31 = vector.load %arg4[%c1_21, %c0_22, %c0_23] : memref<4x8x32xf32, #tpu.memory_space<vmem>>, vector<1x8x32xf32>
    %32 = vector.shape_cast %31 : vector<1x8x32xf32> to vector<8x32xf32>
    %cst_24 = arith.constant 6.250000e-02 : f32
    %33 = vector.broadcast %cst_24 : f32 to vector<8x32xf32>
    %34 = arith.mulf %33, %32 : vector<8x32xf32>
    %c2_25 = arith.constant 2 : index
    %c0_26 = arith.constant 0 : index
    %c0_27 = arith.constant 0 : index
    %35 = vector.load %arg4[%c2_25, %c0_26, %c0_27] : memref<4x8x32xf32, #tpu.memory_space<vmem>>, vector<1x8x32xf32>
    %36 = vector.shape_cast %35 : vector<1x8x32xf32> to vector<8x32xf32>
    %cst_28 = arith.constant -3.125000e-01 : f32
    %37 = vector.broadcast %cst_28 : f32 to vector<8x32xf32>
    %38 = arith.mulf %37, %36 : vector<8x32xf32>
    %39 = arith.addf %34, %38 : vector<8x32xf32>
    %c3_29 = arith.constant 3 : index
    %c0_30 = arith.constant 0 : index
    %c0_31 = arith.constant 0 : index
    %40 = vector.load %arg4[%c3_29, %c0_30, %c0_31] : memref<4x8x32xf32, #tpu.memory_space<vmem>>, vector<1x8x32xf32>
    %41 = vector.shape_cast %40 : vector<1x8x32xf32> to vector<8x32xf32>
    %cst_32 = arith.constant 9.375000e-01 : f32
    %42 = vector.broadcast %cst_32 : f32 to vector<8x32xf32>
    %43 = arith.mulf %42, %41 : vector<8x32xf32>
    %44 = arith.addf %39, %43 : vector<8x32xf32>
    %c0_33 = arith.constant 0 : index
    %c0_34 = arith.constant 0 : index
    %c0_35 = arith.constant 0 : index
    %45 = vector.load %arg3[%c0_33, %c0_34, %c0_35] : memref<8x8x32xf32, #tpu.memory_space<vmem>>, vector<1x8x32xf32>
    %46 = vector.shape_cast %45 : vector<1x8x32xf32> to vector<8x32xf32>
    %cst_36 = arith.constant 3.125000e-01 : f32
    %47 = vector.broadcast %cst_36 : f32 to vector<8x32xf32>
    %48 = arith.mulf %47, %46 : vector<8x32xf32>
    %49 = arith.addf %44, %48 : vector<8x32xf32>
    %c1_37 = arith.constant 1 : index
    %c0_38 = arith.constant 0 : index
    %c0_39 = arith.constant 0 : index
    %50 = vector.load %arg1[%c1_37, %c0_38, %c0_39] : memref<8x8x32xf32, #tpu.memory_space<vmem>>, vector<1x8x32xf32>
    %51 = vector.shape_cast %50 : vector<1x8x32xf32> to vector<8x32xf32>
    %cst_40 = arith.constant dense<0.000000e+00> : vector<8x32xf32>
    %52 = tpu.matmul %49, %3, %cst_40 {dimension_numbers = #tpu.dot_dimension_numbers<[1], [0], [0], [1], [0, 0, 1, 1], [], []>} : vector<8x32xf32>, vector<32x32xf32>, vector<8x32xf32> -> vector<8x32xf32>
    %53 = arith.addf %51, %52 : vector<8x32xf32>
    %54 = math.tanh %53 : vector<8x32xf32>
    %c1_41 = arith.constant 1 : index
    %c0_42 = arith.constant 0 : index
    %c0_43 = arith.constant 0 : index
    %55 = vector.load %arg3[%c1_41, %c0_42, %c0_43] : memref<8x8x32xf32, #tpu.memory_space<vmem>>, vector<1x8x32xf32>
    %56 = vector.shape_cast %55 : vector<1x8x32xf32> to vector<8x32xf32>
    %57 = vector.shape_cast %54 : vector<8x32xf32> to vector<1x8x32xf32>
    tpu.vector_store %arg3[%c1_41, %c0_42, %c0_43], %57 {strides = array<i32>} : memref<8x8x32xf32, #tpu.memory_space<vmem>>, vector<1x8x32xf32>,
    %c2_44 = arith.constant 2 : index
    %c0_45 = arith.constant 0 : index
    %c0_46 = arith.constant 0 : index
    %58 = vector.load %arg4[%c2_44, %c0_45, %c0_46] : memref<4x8x32xf32, #tpu.memory_space<vmem>>, vector<1x8x32xf32>
    %59 = vector.shape_cast %58 : vector<1x8x32xf32> to vector<8x32xf32>
    %cst_47 = arith.constant 6.250000e-02 : f32
    %60 = vector.broadcast %cst_47 : f32 to vector<8x32xf32>
    %61 = arith.mulf %60, %59 : vector<8x32xf32>
    %c3_48 = arith.constant 3 : index
    %c0_49 = arith.constant 0 : index
    %c0_50 = arith.constant 0 : index
    %62 = vector.load %arg4[%c3_48, %c0_49, %c0_50] : memref<4x8x32xf32, #tpu.memory_space<vmem>>, vector<1x8x32xf32>
    %63 = vector.shape_cast %62 : vector<1x8x32xf32> to vector<8x32xf32>
    %cst_51 = arith.constant -3.125000e-01 : f32
    %64 = vector.broadcast %cst_51 : f32 to vector<8x32xf32>
    %65 = arith.mulf %64, %63 : vector<8x32xf32>
    %66 = arith.addf %61, %65 : vector<8x32xf32>
    %c0_52 = arith.constant 0 : index
    %c0_53 = arith.constant 0 : index
    %c0_54 = arith.constant 0 : index
    %67 = vector.load %arg3[%c0_52, %c0_53, %c0_54] : memref<8x8x32xf32, #tpu.memory_space<vmem>>, vector<1x8x32xf32>
    %68 = vector.shape_cast %67 : vector<1x8x32xf32> to vector<8x32xf32>
    %cst_55 = arith.constant 9.375000e-01 : f32
    %69 = vector.broadcast %cst_55 : f32 to vector<8x32xf32>
    %70 = arith.mulf %69, %68 : vector<8x32xf32>
    %71 = arith.addf %66, %70 : vector<8x32xf32>
    %c1_56 = arith.constant 1 : index
    %c0_57 = arith.constant 0 : index
    %c0_58 = arith.constant 0 : index
    %72 = vector.load %arg3[%c1_56, %c0_57, %c0_58] : memref<8x8x32xf32, #tpu.memory_space<vmem>>, vector<1x8x32xf32>
    %73 = vector.shape_cast %72 : vector<1x8x32xf32> to vector<8x32xf32>
    %cst_59 = arith.constant 3.125000e-01 : f32
    %74 = vector.broadcast %cst_59 : f32 to vector<8x32xf32>
    %75 = arith.mulf %74, %73 : vector<8x32xf32>
    %76 = arith.addf %71, %75 : vector<8x32xf32>
    %c2_60 = arith.constant 2 : index
    %c0_61 = arith.constant 0 : index
    %c0_62 = arith.constant 0 : index
    %77 = vector.load %arg1[%c2_60, %c0_61, %c0_62] : memref<8x8x32xf32, #tpu.memory_space<vmem>>, vector<1x8x32xf32>
    %78 = vector.shape_cast %77 : vector<1x8x32xf32> to vector<8x32xf32>
    %cst_63 = arith.constant dense<0.000000e+00> : vector<8x32xf32>
    %79 = tpu.matmul %76, %3, %cst_63 {dimension_numbers = #tpu.dot_dimension_numbers<[1], [0], [0], [1], [0, 0, 1, 1], [], []>} : vector<8x32xf32>, vector<32x32xf32>, vector<8x32xf32> -> vector<8x32xf32>
    %80 = arith.addf %78, %79 : vector<8x32xf32>
    %81 = math.tanh %80 : vector<8x32xf32>
    %c2_64 = arith.constant 2 : index
    %c0_65 = arith.constant 0 : index
    %c0_66 = arith.constant 0 : index
    %82 = vector.load %arg3[%c2_64, %c0_65, %c0_66] : memref<8x8x32xf32, #tpu.memory_space<vmem>>, vector<1x8x32xf32>
    %83 = vector.shape_cast %82 : vector<1x8x32xf32> to vector<8x32xf32>
    %84 = vector.shape_cast %81 : vector<8x32xf32> to vector<1x8x32xf32>
    tpu.vector_store %arg3[%c2_64, %c0_65, %c0_66], %84 {strides = array<i32>} : memref<8x8x32xf32, #tpu.memory_space<vmem>>, vector<1x8x32xf32>,
    %c3_67 = arith.constant 3 : index
    %c0_68 = arith.constant 0 : index
    %c0_69 = arith.constant 0 : index
    %85 = vector.load %arg4[%c3_67, %c0_68, %c0_69] : memref<4x8x32xf32, #tpu.memory_space<vmem>>, vector<1x8x32xf32>
    %86 = vector.shape_cast %85 : vector<1x8x32xf32> to vector<8x32xf32>
    %cst_70 = arith.constant 6.250000e-02 : f32
    %87 = vector.broadcast %cst_70 : f32 to vector<8x32xf32>
    %88 = arith.mulf %87, %86 : vector<8x32xf32>
    %c0_71 = arith.constant 0 : index
    %c0_72 = arith.constant 0 : index
    %c0_73 = arith.constant 0 : index
    %89 = vector.load %arg3[%c0_71, %c0_72, %c0_73] : memref<8x8x32xf32, #tpu.memory_space<vmem>>, vector<1x8x32xf32>
    %90 = vector.shape_cast %89 : vector<1x8x32xf32> to vector<8x32xf32>
    %cst_74 = arith.constant -3.125000e-01 : f32
    %91 = vector.broadcast %cst_74 : f32 to vector<8x32xf32>
    %92 = arith.mulf %91, %90 : vector<8x32xf32>
    %93 = arith.addf %88, %92 : vector<8x32xf32>
    %c1_75 = arith.constant 1 : index
    %c0_76 = arith.constant 0 : index
    %c0_77 = arith.constant 0 : index
    %94 = vector.load %arg3[%c1_75, %c0_76, %c0_77] : memref<8x8x32xf32, #tpu.memory_space<vmem>>, vector<1x8x32xf32>
    %95 = vector.shape_cast %94 : vector<1x8x32xf32> to vector<8x32xf32>
    %cst_78 = arith.constant 9.375000e-01 : f32
    %96 = vector.broadcast %cst_78 : f32 to vector<8x32xf32>
    %97 = arith.mulf %96, %95 : vector<8x32xf32>
    %98 = arith.addf %93, %97 : vector<8x32xf32>
    %c2_79 = arith.constant 2 : index
    %c0_80 = arith.constant 0 : index
    %c0_81 = arith.constant 0 : index
    %99 = vector.load %arg3[%c2_79, %c0_80, %c0_81] : memref<8x8x32xf32, #tpu.memory_space<vmem>>, vector<1x8x32xf32>
    %100 = vector.shape_cast %99 : vector<1x8x32xf32> to vector<8x32xf32>
    %cst_82 = arith.constant 3.125000e-01 : f32
    %101 = vector.broadcast %cst_82 : f32 to vector<8x32xf32>
    %102 = arith.mulf %101, %100 : vector<8x32xf32>
    %103 = arith.addf %98, %102 : vector<8x32xf32>
    %c3_83 = arith.constant 3 : index
    %c0_84 = arith.constant 0 : index
    %c0_85 = arith.constant 0 : index
    %104 = vector.load %arg1[%c3_83, %c0_84, %c0_85] : memref<8x8x32xf32, #tpu.memory_space<vmem>>, vector<1x8x32xf32>
    %105 = vector.shape_cast %104 : vector<1x8x32xf32> to vector<8x32xf32>
    %cst_86 = arith.constant dense<0.000000e+00> : vector<8x32xf32>
    %106 = tpu.matmul %103, %3, %cst_86 {dimension_numbers = #tpu.dot_dimension_numbers<[1], [0], [0], [1], [0, 0, 1, 1], [], []>} : vector<8x32xf32>, vector<32x32xf32>, vector<8x32xf32> -> vector<8x32xf32>
    %107 = arith.addf %105, %106 : vector<8x32xf32>
    %108 = math.tanh %107 : vector<8x32xf32>
    %c3_87 = arith.constant 3 : index
    %c0_88 = arith.constant 0 : index
    %c0_89 = arith.constant 0 : index
    %109 = vector.load %arg3[%c3_87, %c0_88, %c0_89] : memref<8x8x32xf32, #tpu.memory_space<vmem>>, vector<1x8x32xf32>
    %110 = vector.shape_cast %109 : vector<1x8x32xf32> to vector<8x32xf32>
    %111 = vector.shape_cast %108 : vector<8x32xf32> to vector<1x8x32xf32>
    tpu.vector_store %arg3[%c3_87, %c0_88, %c0_89], %111 {strides = array<i32>} : memref<8x8x32xf32, #tpu.memory_space<vmem>>, vector<1x8x32xf32>,
    %c0_90 = arith.constant 0 : index
    %c0_91 = arith.constant 0 : index
    %c0_92 = arith.constant 0 : index
    %112 = vector.load %arg3[%c0_90, %c0_91, %c0_92] : memref<8x8x32xf32, #tpu.memory_space<vmem>>, vector<1x8x32xf32>
    %113 = vector.shape_cast %112 : vector<1x8x32xf32> to vector<8x32xf32>
    %cst_93 = arith.constant 6.250000e-02 : f32
    %114 = vector.broadcast %cst_93 : f32 to vector<8x32xf32>
    %115 = arith.mulf %114, %113 : vector<8x32xf32>
    %c1_94 = arith.constant 1 : index
    %c0_95 = arith.constant 0 : index
    %c0_96 = arith.constant 0 : index
    %116 = vector.load %arg3[%c1_94, %c0_95, %c0_96] : memref<8x8x32xf32, #tpu.memory_space<vmem>>, vector<1x8x32xf32>
    %117 = vector.shape_cast %116 : vector<1x8x32xf32> to vector<8x32xf32>
    %cst_97 = arith.constant -3.125000e-01 : f32
    %118 = vector.broadcast %cst_97 : f32 to vector<8x32xf32>
    %119 = arith.mulf %118, %117 : vector<8x32xf32>
    %120 = arith.addf %115, %119 : vector<8x32xf32>
    %c2_98 = arith.constant 2 : index
    %c0_99 = arith.constant 0 : index
    %c0_100 = arith.constant 0 : index
    %121 = vector.load %arg3[%c2_98, %c0_99, %c0_100] : memref<8x8x32xf32, #tpu.memory_space<vmem>>, vector<1x8x32xf32>
    %122 = vector.shape_cast %121 : vector<1x8x32xf32> to vector<8x32xf32>
    %cst_101 = arith.constant 9.375000e-01 : f32
    %123 = vector.broadcast %cst_101 : f32 to vector<8x32xf32>
    %124 = arith.mulf %123, %122 : vector<8x32xf32>
    %125 = arith.addf %120, %124 : vector<8x32xf32>
    %c3_102 = arith.constant 3 : index
    %c0_103 = arith.constant 0 : index
    %c0_104 = arith.constant 0 : index
    %126 = vector.load %arg3[%c3_102, %c0_103, %c0_104] : memref<8x8x32xf32, #tpu.memory_space<vmem>>, vector<1x8x32xf32>
    %127 = vector.shape_cast %126 : vector<1x8x32xf32> to vector<8x32xf32>
    %cst_105 = arith.constant 3.125000e-01 : f32
    %128 = vector.broadcast %cst_105 : f32 to vector<8x32xf32>
    %129 = arith.mulf %128, %127 : vector<8x32xf32>
    %130 = arith.addf %125, %129 : vector<8x32xf32>
    %c4 = arith.constant 4 : index
    %c0_106 = arith.constant 0 : index
    %c0_107 = arith.constant 0 : index
    %131 = vector.load %arg1[%c4, %c0_106, %c0_107] : memref<8x8x32xf32, #tpu.memory_space<vmem>>, vector<1x8x32xf32>
    %132 = vector.shape_cast %131 : vector<1x8x32xf32> to vector<8x32xf32>
    %cst_108 = arith.constant dense<0.000000e+00> : vector<8x32xf32>
    %133 = tpu.matmul %130, %3, %cst_108 {dimension_numbers = #tpu.dot_dimension_numbers<[1], [0], [0], [1], [0, 0, 1, 1], [], []>} : vector<8x32xf32>, vector<32x32xf32>, vector<8x32xf32> -> vector<8x32xf32>
    %134 = arith.addf %132, %133 : vector<8x32xf32>
    %135 = math.tanh %134 : vector<8x32xf32>
    %c4_109 = arith.constant 4 : index
    %c0_110 = arith.constant 0 : index
    %c0_111 = arith.constant 0 : index
    %136 = vector.load %arg3[%c4_109, %c0_110, %c0_111] : memref<8x8x32xf32, #tpu.memory_space<vmem>>, vector<1x8x32xf32>
    %137 = vector.shape_cast %136 : vector<1x8x32xf32> to vector<8x32xf32>
    %138 = vector.shape_cast %135 : vector<8x32xf32> to vector<1x8x32xf32>
    tpu.vector_store %arg3[%c4_109, %c0_110, %c0_111], %138 {strides = array<i32>} : memref<8x8x32xf32, #tpu.memory_space<vmem>>, vector<1x8x32xf32>,
    %c1_112 = arith.constant 1 : index
    %c0_113 = arith.constant 0 : index
    %c0_114 = arith.constant 0 : index
    %139 = vector.load %arg3[%c1_112, %c0_113, %c0_114] : memref<8x8x32xf32, #tpu.memory_space<vmem>>, vector<1x8x32xf32>
    %140 = vector.shape_cast %139 : vector<1x8x32xf32> to vector<8x32xf32>
    %cst_115 = arith.constant 6.250000e-02 : f32
    %141 = vector.broadcast %cst_115 : f32 to vector<8x32xf32>
    %142 = arith.mulf %141, %140 : vector<8x32xf32>
    %c2_116 = arith.constant 2 : index
    %c0_117 = arith.constant 0 : index
    %c0_118 = arith.constant 0 : index
    %143 = vector.load %arg3[%c2_116, %c0_117, %c0_118] : memref<8x8x32xf32, #tpu.memory_space<vmem>>, vector<1x8x32xf32>
    %144 = vector.shape_cast %143 : vector<1x8x32xf32> to vector<8x32xf32>
    %cst_119 = arith.constant -3.125000e-01 : f32
    %145 = vector.broadcast %cst_119 : f32 to vector<8x32xf32>
    %146 = arith.mulf %145, %144 : vector<8x32xf32>
    %147 = arith.addf %142, %146 : vector<8x32xf32>
    %c3_120 = arith.constant 3 : index
    %c0_121 = arith.constant 0 : index
    %c0_122 = arith.constant 0 : index
    %148 = vector.load %arg3[%c3_120, %c0_121, %c0_122] : memref<8x8x32xf32, #tpu.memory_space<vmem>>, vector<1x8x32xf32>
    %149 = vector.shape_cast %148 : vector<1x8x32xf32> to vector<8x32xf32>
    %cst_123 = arith.constant 9.375000e-01 : f32
    %150 = vector.broadcast %cst_123 : f32 to vector<8x32xf32>
    %151 = arith.mulf %150, %149 : vector<8x32xf32>
    %152 = arith.addf %147, %151 : vector<8x32xf32>
    %c4_124 = arith.constant 4 : index
    %c0_125 = arith.constant 0 : index
    %c0_126 = arith.constant 0 : index
    %153 = vector.load %arg3[%c4_124, %c0_125, %c0_126] : memref<8x8x32xf32, #tpu.memory_space<vmem>>, vector<1x8x32xf32>
    %154 = vector.shape_cast %153 : vector<1x8x32xf32> to vector<8x32xf32>
    %cst_127 = arith.constant 3.125000e-01 : f32
    %155 = vector.broadcast %cst_127 : f32 to vector<8x32xf32>
    %156 = arith.mulf %155, %154 : vector<8x32xf32>
    %157 = arith.addf %152, %156 : vector<8x32xf32>
    %c5 = arith.constant 5 : index
    %c0_128 = arith.constant 0 : index
    %c0_129 = arith.constant 0 : index
    %158 = vector.load %arg1[%c5, %c0_128, %c0_129] : memref<8x8x32xf32, #tpu.memory_space<vmem>>, vector<1x8x32xf32>
    %159 = vector.shape_cast %158 : vector<1x8x32xf32> to vector<8x32xf32>
    %cst_130 = arith.constant dense<0.000000e+00> : vector<8x32xf32>
    %160 = tpu.matmul %157, %3, %cst_130 {dimension_numbers = #tpu.dot_dimension_numbers<[1], [0], [0], [1], [0, 0, 1, 1], [], []>} : vector<8x32xf32>, vector<32x32xf32>, vector<8x32xf32> -> vector<8x32xf32>
    %161 = arith.addf %159, %160 : vector<8x32xf32>
    %162 = math.tanh %161 : vector<8x32xf32>
    %c5_131 = arith.constant 5 : index
    %c0_132 = arith.constant 0 : index
    %c0_133 = arith.constant 0 : index
    %163 = vector.load %arg3[%c5_131, %c0_132, %c0_133] : memref<8x8x32xf32, #tpu.memory_space<vmem>>, vector<1x8x32xf32>
    %164 = vector.shape_cast %163 : vector<1x8x32xf32> to vector<8x32xf32>
    %165 = vector.shape_cast %162 : vector<8x32xf32> to vector<1x8x32xf32>
    tpu.vector_store %arg3[%c5_131, %c0_132, %c0_133], %165 {strides = array<i32>} : memref<8x8x32xf32, #tpu.memory_space<vmem>>, vector<1x8x32xf32>,
    %c2_134 = arith.constant 2 : index
    %c0_135 = arith.constant 0 : index
    %c0_136 = arith.constant 0 : index
    %166 = vector.load %arg3[%c2_134, %c0_135, %c0_136] : memref<8x8x32xf32, #tpu.memory_space<vmem>>, vector<1x8x32xf32>
    %167 = vector.shape_cast %166 : vector<1x8x32xf32> to vector<8x32xf32>
    %cst_137 = arith.constant 6.250000e-02 : f32
    %168 = vector.broadcast %cst_137 : f32 to vector<8x32xf32>
    %169 = arith.mulf %168, %167 : vector<8x32xf32>
    %c3_138 = arith.constant 3 : index
    %c0_139 = arith.constant 0 : index
    %c0_140 = arith.constant 0 : index
    %170 = vector.load %arg3[%c3_138, %c0_139, %c0_140] : memref<8x8x32xf32, #tpu.memory_space<vmem>>, vector<1x8x32xf32>
    %171 = vector.shape_cast %170 : vector<1x8x32xf32> to vector<8x32xf32>
    %cst_141 = arith.constant -3.125000e-01 : f32
    %172 = vector.broadcast %cst_141 : f32 to vector<8x32xf32>
    %173 = arith.mulf %172, %171 : vector<8x32xf32>
    %174 = arith.addf %169, %173 : vector<8x32xf32>
    %c4_142 = arith.constant 4 : index
    %c0_143 = arith.constant 0 : index
    %c0_144 = arith.constant 0 : index
    %175 = vector.load %arg3[%c4_142, %c0_143, %c0_144] : memref<8x8x32xf32, #tpu.memory_space<vmem>>, vector<1x8x32xf32>
    %176 = vector.shape_cast %175 : vector<1x8x32xf32> to vector<8x32xf32>
    %cst_145 = arith.constant 9.375000e-01 : f32
    %177 = vector.broadcast %cst_145 : f32 to vector<8x32xf32>
    %178 = arith.mulf %177, %176 : vector<8x32xf32>
    %179 = arith.addf %174, %178 : vector<8x32xf32>
    %c5_146 = arith.constant 5 : index
    %c0_147 = arith.constant 0 : index
    %c0_148 = arith.constant 0 : index
    %180 = vector.load %arg3[%c5_146, %c0_147, %c0_148] : memref<8x8x32xf32, #tpu.memory_space<vmem>>, vector<1x8x32xf32>
    %181 = vector.shape_cast %180 : vector<1x8x32xf32> to vector<8x32xf32>
    %cst_149 = arith.constant 3.125000e-01 : f32
    %182 = vector.broadcast %cst_149 : f32 to vector<8x32xf32>
    %183 = arith.mulf %182, %181 : vector<8x32xf32>
    %184 = arith.addf %179, %183 : vector<8x32xf32>
    %c6 = arith.constant 6 : index
    %c0_150 = arith.constant 0 : index
    %c0_151 = arith.constant 0 : index
    %185 = vector.load %arg1[%c6, %c0_150, %c0_151] : memref<8x8x32xf32, #tpu.memory_space<vmem>>, vector<1x8x32xf32>
    %186 = vector.shape_cast %185 : vector<1x8x32xf32> to vector<8x32xf32>
    %cst_152 = arith.constant dense<0.000000e+00> : vector<8x32xf32>
    %187 = tpu.matmul %184, %3, %cst_152 {dimension_numbers = #tpu.dot_dimension_numbers<[1], [0], [0], [1], [0, 0, 1, 1], [], []>} : vector<8x32xf32>, vector<32x32xf32>, vector<8x32xf32> -> vector<8x32xf32>
    %188 = arith.addf %186, %187 : vector<8x32xf32>
    %189 = math.tanh %188 : vector<8x32xf32>
    %c6_153 = arith.constant 6 : index
    %c0_154 = arith.constant 0 : index
    %c0_155 = arith.constant 0 : index
    %190 = vector.load %arg3[%c6_153, %c0_154, %c0_155] : memref<8x8x32xf32, #tpu.memory_space<vmem>>, vector<1x8x32xf32>
    %191 = vector.shape_cast %190 : vector<1x8x32xf32> to vector<8x32xf32>
    %192 = vector.shape_cast %189 : vector<8x32xf32> to vector<1x8x32xf32>
    tpu.vector_store %arg3[%c6_153, %c0_154, %c0_155], %192 {strides = array<i32>} : memref<8x8x32xf32, #tpu.memory_space<vmem>>, vector<1x8x32xf32>,
    %c3_156 = arith.constant 3 : index
    %c0_157 = arith.constant 0 : index
    %c0_158 = arith.constant 0 : index
    %193 = vector.load %arg3[%c3_156, %c0_157, %c0_158] : memref<8x8x32xf32, #tpu.memory_space<vmem>>, vector<1x8x32xf32>
    %194 = vector.shape_cast %193 : vector<1x8x32xf32> to vector<8x32xf32>
    %cst_159 = arith.constant 6.250000e-02 : f32
    %195 = vector.broadcast %cst_159 : f32 to vector<8x32xf32>
    %196 = arith.mulf %195, %194 : vector<8x32xf32>
    %c4_160 = arith.constant 4 : index
    %c0_161 = arith.constant 0 : index
    %c0_162 = arith.constant 0 : index
    %197 = vector.load %arg3[%c4_160, %c0_161, %c0_162] : memref<8x8x32xf32, #tpu.memory_space<vmem>>, vector<1x8x32xf32>
    %198 = vector.shape_cast %197 : vector<1x8x32xf32> to vector<8x32xf32>
    %cst_163 = arith.constant -3.125000e-01 : f32
    %199 = vector.broadcast %cst_163 : f32 to vector<8x32xf32>
    %200 = arith.mulf %199, %198 : vector<8x32xf32>
    %201 = arith.addf %196, %200 : vector<8x32xf32>
    %c5_164 = arith.constant 5 : index
    %c0_165 = arith.constant 0 : index
    %c0_166 = arith.constant 0 : index
    %202 = vector.load %arg3[%c5_164, %c0_165, %c0_166] : memref<8x8x32xf32, #tpu.memory_space<vmem>>, vector<1x8x32xf32>
    %203 = vector.shape_cast %202 : vector<1x8x32xf32> to vector<8x32xf32>
    %cst_167 = arith.constant 9.375000e-01 : f32
    %204 = vector.broadcast %cst_167 : f32 to vector<8x32xf32>
    %205 = arith.mulf %204, %203 : vector<8x32xf32>
    %206 = arith.addf %201, %205 : vector<8x32xf32>
    %c6_168 = arith.constant 6 : index
    %c0_169 = arith.constant 0 : index
    %c0_170 = arith.constant 0 : index
    %207 = vector.load %arg3[%c6_168, %c0_169, %c0_170] : memref<8x8x32xf32, #tpu.memory_space<vmem>>, vector<1x8x32xf32>
    %208 = vector.shape_cast %207 : vector<1x8x32xf32> to vector<8x32xf32>
    %cst_171 = arith.constant 3.125000e-01 : f32
    %209 = vector.broadcast %cst_171 : f32 to vector<8x32xf32>
    %210 = arith.mulf %209, %208 : vector<8x32xf32>
    %211 = arith.addf %206, %210 : vector<8x32xf32>
    %c7 = arith.constant 7 : index
    %c0_172 = arith.constant 0 : index
    %c0_173 = arith.constant 0 : index
    %212 = vector.load %arg1[%c7, %c0_172, %c0_173] : memref<8x8x32xf32, #tpu.memory_space<vmem>>, vector<1x8x32xf32>
    %213 = vector.shape_cast %212 : vector<1x8x32xf32> to vector<8x32xf32>
    %cst_174 = arith.constant dense<0.000000e+00> : vector<8x32xf32>
    %214 = tpu.matmul %211, %3, %cst_174 {dimension_numbers = #tpu.dot_dimension_numbers<[1], [0], [0], [1], [0, 0, 1, 1], [], []>} : vector<8x32xf32>, vector<32x32xf32>, vector<8x32xf32> -> vector<8x32xf32>
    %215 = arith.addf %213, %214 : vector<8x32xf32>
    %216 = math.tanh %215 : vector<8x32xf32>
    %c7_175 = arith.constant 7 : index
    %c0_176 = arith.constant 0 : index
    %c0_177 = arith.constant 0 : index
    %217 = vector.load %arg3[%c7_175, %c0_176, %c0_177] : memref<8x8x32xf32, #tpu.memory_space<vmem>>, vector<1x8x32xf32>
    %218 = vector.shape_cast %217 : vector<1x8x32xf32> to vector<8x32xf32>
    %219 = vector.shape_cast %216 : vector<8x32xf32> to vector<1x8x32xf32>
    tpu.vector_store %arg3[%c7_175, %c0_176, %c0_177], %219 {strides = array<i32>} : memref<8x8x32xf32, #tpu.memory_space<vmem>>, vector<1x8x32xf32>,
    %c4_178 = arith.constant 4 : index
    %c0_179 = arith.constant 0 : index
    %c0_180 = arith.constant 0 : index
    %220 = vector.load %arg3[%c4_178, %c0_179, %c0_180] : memref<8x8x32xf32, #tpu.memory_space<vmem>>, vector<4x8x32xf32>
    %c0_181 = arith.constant 0 : index
    %c0_182 = arith.constant 0 : index
    %c0_183 = arith.constant 0 : index
    %221 = vector.load %arg4[%c0_181, %c0_182, %c0_183] : memref<4x8x32xf32, #tpu.memory_space<vmem>>, vector<4x8x32xf32>
    tpu.vector_store %arg4[%c0_181, %c0_182, %c0_183], %220 {strides = array<i32>} : memref<4x8x32xf32, #tpu.memory_space<vmem>>, vector<4x8x32xf32>,
    return
  }
  func.func @transform_0(%arg0: i32) -> (i32, i32, i32) {
    %c0_i32 = arith.constant 0 : i32
    %c0_i32_0 = arith.constant 0 : i32
    %c0_i32_1 = arith.constant 0 : i32
    return %arg0, %c0_i32, %c0_i32_0 : i32, i32, i32
  }
  func.func @transform_1(%arg0: i32) -> (i32, i32) {
    %c0_i32 = arith.constant 0 : i32
    %c0_i32_0 = arith.constant 0 : i32
    %c0_i32_1 = arith.constant 0 : i32
    return %c0_i32, %c0_i32_0 : i32, i32
  }
  func.func @transform_2(%arg0: i32) -> (i32, i32, i32) {
    %c0_i32 = arith.constant 0 : i32
    %c0_i32_0 = arith.constant 0 : i32
    %c0_i32_1 = arith.constant 0 : i32
    return %arg0, %c0_i32, %c0_i32_0 : i32, i32, i32
  }
}

</mosaic_0001>

<bundles_post_ra>
// kernel: tpu_custom_call.1
= control target key start
LH: loop header
LB: loop body
LE: loop exit
PB: predicated region body
PF: predicated region fallthrough
CT: control target
= control target key end

     0   :  { %7 = vsyncpa [#allocation4], 0  ;;  %s1806_s0 = inlined_call_operand.hbm [shape: f32[16,8,32], index: 0, kind: input, shape index: {}]   ;;  %s1807_s1 = inlined_call_operand.hbm [shape: f32[32,32], index: 1, kind: input, shape index: {}]   ;;  %s1808_s2 = inlined_call_operand.hbm [shape: f32[16,8,32], index: 2, kind: output, shape index: {}]  }
   0x1   :  { %9 = vsyncpa [#allocation4 + $0x1], 0 }
   0x2   :  { %10 = vsyncpa [#allocation7], 0 }
   0x3   :  { %11 = vsyncpa [#allocation5], 0 }
   0x4   :  { %13 = vsyncpa [#allocation5 + $0x1], 0  ;;  %s1495_s9 = smov 0   ;;  %s1497_s10 = smov 0  }
   0x5   :  { %s1499_s11 = smov 0   ;;  %s1501_s12 = smov 0  }
   0x6 LB: > { %s1516_s13 = sadd.s32 4294967295, %s1467_s12   ;;  %s1019_s14 = sadd.s32 4294967294, %s1467_s12   ;;  %s1467_s12 = sphi %s1501_s12, %s1829_s12   ;;  %s1463_s11 = sphi %s1499_s11, %s1828_s11   ;;  %s1459_s10 = sphi %s1497_s10, %s1827_s10   ;;  %s1455_s9 = sphi %s1495_s9, %s1826_s9  }
   0x7   : > { %p39_p0 = scmp.ne.s32.totalorder %s1459_s10, %s1455_s9  ;;  %p1809_p1 = scmp.eq.s32.totalorder %s1516_s13, 0 }
   0x8   : > { %p90_p3 = scmp.eq.s32.totalorder %s1019_s14, 1  ;;  %p1020_p5 = scmp.ge.s32.totalorder %s1467_s12, 1 }
   0x9   : > { %p1525_p4 = por %p1809_p1, %p39_p0  ;;  %p97_p7 = scmp.lt.s32.totalorder %s1467_s12, 3 }
   0xa   : > { %p1530_p6 = por %p90_p3, %p39_p0  ;;  %s1469_s18 = smov [#allocation6]  }
   0xb   : > { %s1812_s15 = scalar_select %p1525_p4, 1, 0 }
   0xc   : > { %s1813_s16 = scalar_select %p1530_p6, 1, 0 }
   0xd   : > { %p1536_p9 = pnand %p1020_p5, %p97_p7  ;;  %s109_s19 = sshll.u32 %s1469_s18, 4  ;;  %s1540_s19 = int_to_ptr.vmem [resolvable:$true] %s109_s19 }
   0xe   : > { %s1552_s21 = sadd.s32 1, %s1467_s12   ;;  %s26_s22 = sadd.s32 1, %s1463_s11 }
   0xf   : > { %s1814_s17 = scalar_select %p1536_p9, 1, 0 }
  0x10   : > { %p1266_p10 = pneg %p1536_p9  ;;  %s23_s23 = ssub.s32 %s1467_s12, %s1552_s21 }
  0x11   : > { %s1339_s26 = scalar_lea.hbm %s1807_s1, 512 }
  0x12   : > { %p1547_p12 = pnand %p1266_p10, %p1809_p1  ;;  %p1340_p13 = scmp.ne.s32.totalorder %s1807_s1, %s1339_s26 }
  0x13   : > { %p1346_p7 = scmp.lt.u32.totalorder %s1339_s26, %s1807_s1 }
  0x14   : > { %p1341_p0 = pneg %p1547_p12 }
  0x16   : > { %p1342_p3 = pnand %p1341_p0, %p1340_p13 }
  0x18   : > { %p1343_p5 = pneg %p1342_p3 }
  0x1a   : > { %p1348_p10 = pnand %p1346_p7, %p1343_p5 }
  0x1c   : > { %1351 = shalt.err (!%p1348_p10)
}
  0x1d   : > { %s1352_s3 = scalar_lea.vmem %s1540_s19, 512  ;;  %p1360_p2 = scmp.lt.s32.totalorder %s1540_s19, %s1540_s19 }
  0x1e   : > { %p1353_p11 = scmp.ne.s32.totalorder %s1540_s19, %s1352_s3  ;;  %p1361_p6 = scmp.lt.s32.totalorder %s1352_s3, %s1352_s3 }
  0x20   : > { %p1355_p8 = pnand %p1353_p11, %p1341_p0  ;;  %p1362_p4 = por %p1361_p6, %p1360_p2 }
  0x22   : > { %p1356_p1 = pneg %p1355_p8 }
  0x24   : > { %p1363_p9 = pnand %p1362_p4, %p1356_p1 }
  0x26   : > { %1366 = shalt.err (!%p1363_p9)
}
  0x27   : > { %s1470_s4 = smov 128   ;;  %s1471_s5 = smov 8  }
  0x28   : > { %1269 = dma.hbm_to_vmem [thread:$0]  (!%p1547_p12), %s1807_s1, 512, %s1540_s19, [#allocation7], %s1470_s4, %s1470_s4, %s1471_s5  }
  0x29   : > { %p24_p1 = scmp.eq.s32.totalorder %s23_s23, 0  ;;  %p33_p2 = scmp.ne.s32.totalorder %s1463_s11, %s1459_s10 }
  0x2a   : > { %p34_p4 = scmp.eq.s32.totalorder %s1467_s12, 0  ;;  %p1279_p6 = scmp.lt.s32.totalorder %s1467_s12, 2 }
  0x2b   : > { %s1586_s8 = scalar_select %p24_p1, %s1463_s11, %s26_s22  }
  0x2c   : > { %p35_p8 = por %p34_p4, %p33_p2  ;;  %p1816_p9 = scmp.eq.s32.totalorder %s1516_s13, 1 }
  0x2d   : > { %s123_s18 = sand.u32 1, %s1463_s11   ;;  %s1080_s20 = sshll.u32 %s1467_s12, 10 }
  0x2e   : > { %p1590_p11 = por %p1816_p9, %p33_p2  ;;  %s1023_s24 = sshll.u32 %s123_s18, 6 }
  0x2f   : > { %s1599_s27 = scalar_lea.hbm %s1806_s0, %s1080_s20  ;;  %s127_s19 = scalar_lea.vmem [#allocation3], %s1023_s24 }
  0x30   : > { %s134_s22 = sshll.u32 %s127_s19, 4  ;;  %p1601_p12 = pnand %p1279_p6, %p35_p8  ;;  %s1605_s22 = int_to_ptr.vmem [resolvable:$true] %s134_s22 }
  0x31   : > { %s1607_s28 = scalar_lea.sflag [#allocation4], %s123_s18  ;;  %s1367_s29 = scalar_lea.hbm %s1599_s27, 1024 }
  0x32   : > { %p1368_p13 = scmp.ne.s32.totalorder %s1599_s27, %s1367_s29  ;;  %p1369_p0 = pneg %p1601_p12 }
  0x33   : > { %s1372_s6 = scalar_lea.hbm %s1806_s0, 2048  ;;  %p1373_p7 = scmp.lt.u32.totalorder %s1599_s27, %s1806_s0 }
  0x34   : > { %p1370_p3 = pnand %p1369_p0, %p1368_p13  ;;  %p1374_p10 = scmp.lt.u32.totalorder %s1372_s6, %s1367_s29 }
  0x35   : > { %p1376_p2 = scmp.lt.u32.totalorder %s1367_s29, %s1599_s27 }
  0x36   : > { %p1371_p5 = pneg %p1370_p3  ;;  %p1375_p1 = por %p1374_p10, %p1373_p7 }
  0x38   : > { %p1377_p4 = por %p1376_p2, %p1375_p1 }
  0x3a   : > { %p1378_p6 = pnand %p1377_p4, %p1371_p5 }
  0x3c   : > { %1381 = shalt.err (!%p1378_p6)
}
  0x3d   : > { %s1382_s18 = scalar_lea.vmem %s1605_s22, 1024  ;;  %s1472_s24 = smov [#allocation3]  }
  0x3e   : > { %p1383_p8 = scmp.ne.s32.totalorder %s1605_s22, %s1382_s18  ;;  %s1387_s25 = sshll.u32 %s1472_s24, 4  ;;  %s1388_s25 = int_to_ptr.vmem [resolvable:$false] %s1387_s25 }
  0x3f   : > { %s1389_s26 = scalar_lea.vmem %s1388_s25, 2048  ;;  %p1390_p3 = scmp.lt.s32.totalorder %s1605_s22, %s1388_s25 }
  0x40   : > { %p1385_p9 = pnand %p1383_p8, %p1369_p0  ;;  %p1391_p7 = scmp.lt.s32.totalorder %s1389_s26, %s1382_s18 }
  0x42   : > { %p1386_p13 = pneg %p1385_p9  ;;  %p1392_p10 = por %p1391_p7, %p1390_p3 }
  0x44   : > { %p1393_p1 = pnand %p1392_p10, %p1386_p13 }
  0x46   : > { %1396 = shalt.err (!%p1393_p1)
}
  0x47   : > { %1273 = dma.hbm_to_vmem [thread:$0]  (!%p1601_p12), %s1599_s27, 1024, %s1605_s22, %s1607_s28, %s1470_s4, %s1470_s4, %s1471_s5  }
  0x48   : > { %p1819_p0 = scmp.ne.s32.totalorder %s1814_s17, 0 }
  0x49   : > { %s1641_s19 = sand.u32 (!%p1819_p0), 1, %s1459_s10   ;;  %p1820_p5 = scmp.ne.s32.totalorder (!%p1819_p0), %s1812_s15, 0 }
  0x4a   : > { %146 = sbr.rel (%p1819_p0) target bundleno = 2003 (0x7d3), region = 28  ;;  %s1027_s29 = sshll.u32 (!%p1819_p0), %s1641_s19, 6 }
  0x4b   : > { %s149_s30 = scalar_lea.sflag (!%p1819_p0), [#allocation4], %s1641_s19  ;;  %s1645_s3 = scalar_lea.vmem (!%p1819_p0), [#allocation3], %s1027_s29 }
  0x51   : > { %1442 = dma.done.wait (%p1820_p5), %s149_s30, 1024  }
  0x52   : > { %1444 = vsyncadd (%p1820_p5), %s149_s30, 4294966272  ;;  %p1821_p12 = scmp.eq.s32.totalorder %s1516_s13, 0 }
  0x54   : > { %1446 = dma.done.wait (%p1821_p12), [#allocation7], 512   ;;  %p1822_p2 = pmov %p1821_p12 }
  0x55   : > { %s1655_s17 = scalar_lea.vmem [#allocation8], %s1027_s29  ;;  %p1823_p4 = scmp.ne.s32.totalorder %s1516_s13, 0 }
  0x56   : > { %1448 = vsyncadd (%p1822_p2), [#allocation7], 4294966784  ;;  %vm183_vm0 = vcmask (!%p1823_p4), 261120   ;;  %v1473_v0 = vmov (!%p1823_p4), 0.0  }
  0x57   : > { %182 = sbr.rel (%p1823_p4) target bundleno = 94 (0x5e), region = 40  ;;  %184 = vst.msk [vmem:[#allocation2] sm:$0xff] (!%p1823_p4), %vm183_vm0, %v1473_v0  ;;  %185 = vst.msk [vmem:[#allocation2 + $0x8] sm:$0xff] (!%p1823_p4), %vm183_vm0, %v1473_v0 }
  0x58   : > { %186 = vst.msk [vmem:[#allocation2 + $0x10] sm:$0xff] (!%p1823_p4), %vm183_vm0, %v1473_v0  ;;  %187 = vst.msk [vmem:[#allocation2 + $0x18] sm:$0xff] (!%p1823_p4), %vm183_vm0, %v1473_v0 }
  0x5e PF: > { %v188_v1 = vld [vmem:[#allocation6] sm:$0xff]  ;;  %v189_v2 = vld [vmem:[#allocation6 + $0x8] sm:$0xff]  ;;  %v190_v3 = vld [vmem:[#allocation6 + $0x10] sm:$0xff]  ;;  %v1474_v4 = vmov 0.0|0.0   ;;  %vm1475_vm1 = vmmov 0   ;;  %v1476_v7 = vmov 0.0  }
  0x5f   : > { %1210 = vmatprep.subr.bf16.mxu0 %v1474_v4  ;;  %v1660_v5 = vpack.c.bf16 %v189_v2, %v188_v1  ;;  %v191_v6 = vld [vmem:[#allocation6 + $0x18] sm:$0xff]  ;;  %1130 = vmatprep.mubr.msk.f32.mxu0 %vm1475_vm1, %v1476_v7  ;;  %v192_v8 = vld [vmem:[#allocation2] sm:$0xff]  ;;  %v195_v9 = vld [vmem:[#allocation2 + $0x8] sm:$0xff]  ;;  %vm207_vm2 = vcmask 261120   ;;  %s1081_s15 = sshll.u32 %s1516_s13, 10  ;;  %s936_s4 = sshll.u32 %s1655_s17, 4  ;;  %s1758_s4 = int_to_ptr.vmem [resolvable:$true] %s936_s4 }
  0x60   : > { %v193_v10 = vmul.f32 0.0625, %v192_v8  ;;  %v196_v11 = vmul.f32 -0.3125, %v195_v9  ;;  %v199_v12 = vld [vmem:[#allocation2 + $0x10] sm:$0xff]  ;;  %v203_v13 = vld [vmem:[#allocation2 + $0x18] sm:$0xff]  ;;  %1216 = vmatprep.subr.bf16.mxu1 %v1474_v4  ;;  %1141 = vmatprep.mubr.msk.f32.mxu1 %vm1475_vm1, %v1476_v7  ;;  %v1668_v14 = vpack.c.bf16 %v191_v6, %v190_v3  ;;  %v206_v20 = vld [vmem:[%s1645_s3] sm:$0xff]  ;;  %v285_v24 = vmul.f32 0.0625, %v195_v9  ;;  %s1756_s22 = scalar_lea.hbm %s1808_s2, %s1081_s15 }
  0x61   : > { %1212 = vmatpush3.bf16.msra.mxu0 %v1660_v5  ;;  %v200_v15 = vmul.f32 0.9375, %v199_v12  ;;  %1218 = vmatpush3.bf16.msra.mxu1 %v1660_v5  ;;  %v204_v17 = vmul.f32 0.3125, %v203_v13  ;;  %v287_v25 = vmul.f32 -0.3125, %v199_v12  ;;  %v290_v28 = vmul.f32 0.9375, %v203_v13  ;;  %v1032_v33 = vld [vmem:[%s1645_s3 + $0x8] sm:$0xff]  ;;  %v1036_v54 = vld [vmem:[%s1645_s3 + $0x10] sm:$0xff] }
  0x62   : > { %1213 = vmatprep.subr.bf16.mxu0 %v1474_v4  ;;  %v197_v16 = vadd.f32 %v196_v11, %v193_v10  ;;  %1219 = vmatprep.subr.bf16.mxu1 %v1474_v4  ;;  %v375_v38 = vmul.f32 0.0625, %v199_v12  ;;  %v377_v39 = vmul.f32 -0.3125, %v203_v13  ;;  %v465_v42 = vmul.f32 0.0625, %v203_v13  ;;  %v1041_v3 = vld [vmem:[%s1645_s3 + $0x18] sm:$0xff]  ;;  %s923_s23 = scalar_lea.sflag [#allocation5], %s1641_s19  ;;  %s1397_s28 = scalar_lea.vmem %s1758_s4, 1024 }
  0x63   : > { %v288_v27 = vadd.f32 %v287_v25, %v285_v24  ;;  %p1398_p6 = scmp.ne.s32.totalorder %s1758_s4, %s1397_s28  ;;  %s1477_s13 = smov [#allocation8]  }
  0x64   : > { %v201_v18 = vadd.f32 %v200_v15, %v197_v16  ;;  %v378_v40 = vadd.f32 %v377_v39, %v375_v38  ;;  %s1401_s6 = sshll.u32 %s1477_s13, 4  ;;  %s1402_s6 = int_to_ptr.vmem [resolvable:$false] %s1401_s6 }
  0x65   : > { %1215 = vmatpush3.bf16.msra.mxu0 %v1668_v14  ;;  %1221 = vmatpush3.bf16.msra.mxu1 %v1668_v14  ;;  %v291_v29 = vadd.f32 %v290_v28, %v288_v27  ;;  %p1399_p8 = pnand %p1398_p6, %p1590_p11  ;;  %s1403_s7 = scalar_lea.vmem %s1402_s6, 2048 }
  0x66   : > { %v205_v19 = vadd.f32 %v204_v17, %v201_v18  ;;  %1222 = vmatprep.subr.bf16.mxu0 %v1474_v4  ;;  %1228 = vmatprep.subr.bf16.mxu1 %v1474_v4  ;;  %p1404_p13 = scmp.lt.s32.totalorder %s1758_s4, %s1402_s6  ;;  %p1405_p3 = scmp.lt.s32.totalorder %s1403_s7, %s1397_s28 }
  0x67   : > { %p1400_p9 = pneg %p1399_p8 }
  0x68   : > { %1131 = vmatmul.mubr.msk.f32.vlgmr.msra.gmra.mrb[0].mxu0 %vm207_vm2, %v205_v19  ;;  %p1406_p7 = por %p1405_p3, %p1404_p13 }
  0x69   : > { %1224 = vmatpush3.bf16.msra.mxu0 %v1660_v5  ;;  %1152 = vmatprep.mubr.msk.f32.mxu0 %vm1475_vm1, %v1476_v7 }
  0x6a   : > { %1225 = vmatprep.subr.bf16.mxu0 %v1474_v4  ;;  %p1407_p10 = pnand %p1406_p7, %p1400_p9 }
  0x6d   : > { %1227 = vmatpush3.bf16.msra.mxu0 %v1668_v14 }
  0x6e   : > { %1234 = vmatprep.subr.bf16.mxu0 %v1474_v4 }
 0x13b   : > { %v277_v21 = vpop.f32.mrb[0].mxu0 }
 0x13c   : > { %v281_v22 = vadd.f32 %v277_v21, %v206_v20  ;;  %v1132_v23 = vpop.f32.mrb[1].mxu0  ;;  %v1047_v20 = vld [vmem:[%s1645_s3 + $0x20] sm:$0xff] }
 0x13e   : > { %1323 = vtanh.f32 %v281_v22 }
 0x148   : > { %v1324_v26 = vpop.eup %1323 }
 0x149   : > { %283 = vst.msk [vmem:[%s1655_s17] sm:$0xff] %vm207_vm2, %v1324_v26 }
 0x150   : > { %v292_v30 = vld [vmem:[%s1655_s17] sm:$0xff] }
 0x151   : > { %v293_v31 = vmul.f32 0.3125, %v292_v30  ;;  %v380_v41 = vmul.f32 0.9375, %v292_v30  ;;  %v467_v43 = vmul.f32 -0.3125, %v292_v30  ;;  %v555_v46 = vmul.f32 0.0625, %v292_v30 }
 0x153   : > { %v294_v32 = vadd.f32 %v293_v31, %v291_v29  ;;  %v381_v44 = vadd.f32 %v380_v41, %v378_v40  ;;  %v468_v48 = vadd.f32 %v467_v43, %v465_v42 }
 0x155   : > { %1142 = vmatmul.mubr.msk.f32.vlgmr.msra.gmra.mrb[0].mxu1 %vm207_vm2, %v294_v32 }
 0x156   : > { %1230 = vmatpush3.bf16.msra.mxu1 %v1660_v5  ;;  %1163 = vmatprep.mubr.msk.f32.mxu1 %vm1475_vm1, %v1476_v7 }
 0x157   : > { %1231 = vmatprep.subr.bf16.mxu1 %v1474_v4 }
 0x15a   : > { %1233 = vmatpush3.bf16.msra.mxu1 %v1668_v14 }
 0x15b   : > { %1240 = vmatprep.subr.bf16.mxu1 %v1474_v4 }
 0x228   : > { %v366_v34 = vpop.f32.mrb[0].mxu1 }
 0x229   : > { %v370_v35 = vadd.f32 %v1032_v33, %v366_v34  ;;  %v1143_v36 = vpop.f32.mrb[1].mxu1  ;;  %v1054_v33 = vld [vmem:[%s1645_s3 + $0x28] sm:$0xff] }
 0x22b   : > { %1325 = vtanh.f32 %v370_v35 }
 0x235   : > { %v1326_v37 = vpop.eup %1325 }
 0x236   : > { %1034 = vst.msk [vmem:[%s1655_s17 + $0x8] sm:$0xff] %vm207_vm2, %v1326_v37 }
 0x23d   : > { %v1035_v45 = vld [vmem:[%s1655_s17 + $0x8] sm:$0xff] }
 0x23e   : > { %v383_v47 = vmul.f32 0.3125, %v1035_v45  ;;  %v470_v49 = vmul.f32 0.9375, %v1035_v45  ;;  %v557_v50 = vmul.f32 -0.3125, %v1035_v45  ;;  %v645_v62 = vmul.f32 0.0625, %v1035_v45 }
 0x240   : > { %v384_v51 = vadd.f32 %v383_v47, %v381_v44  ;;  %v471_v52 = vadd.f32 %v470_v49, %v468_v48  ;;  %v558_v53 = vadd.f32 %v557_v50, %v555_v46  ;;  %v1068_v47 = vld [vmem:[%s1645_s3 + $0x38] sm:$0xff] }
 0x242   : > { %1153 = vmatmul.mubr.msk.f32.vlgmr.msra.gmra.mrb[2].mxu0 %vm207_vm2, %v384_v51 }
 0x243   : > { %1236 = vmatpush3.bf16.msra.mxu0 %v1660_v5  ;;  %1174 = vmatprep.mubr.msk.f32.mxu0 %vm1475_vm1, %v1476_v7 }
 0x244   : > { %1237 = vmatprep.subr.bf16.mxu0 %v1474_v4 }
 0x247   : > { %1239 = vmatpush3.bf16.msra.mxu0 %v1668_v14 }
 0x248   : > { %1246 = vmatprep.subr.bf16.mxu0 %v1474_v4 }
 0x315   : > { %v456_v55 = vpop.f32.mrb[2].mxu0 }
 0x316   : > { %v460_v56 = vadd.f32 %v1036_v54, %v456_v55  ;;  %v1154_v57 = vpop.f32.mrb[3].mxu0 }
 0x318   : > { %1327 = vtanh.f32 %v460_v56 }
 0x322   : > { %v1328_v58 = vpop.eup %1327 }
 0x323   : > { %1038 = vst.msk [vmem:[%s1655_s17 + $0x10] sm:$0xff] %vm207_vm2, %v1328_v58 }
 0x32a   : > { %v1040_v59 = vld [vmem:[%s1655_s17 + $0x10] sm:$0xff] }
 0x32b   : > { %v473_v60 = vmul.f32 0.3125, %v1040_v59  ;;  %v560_v61 = vmul.f32 0.9375, %v1040_v59  ;;  %v647_v63 = vmul.f32 -0.3125, %v1040_v59  ;;  %v735_v15 = vmul.f32 0.0625, %v1040_v59 }
 0x32d   : > { %v474_v0 = vadd.f32 %v473_v60, %v471_v52  ;;  %v561_v1 = vadd.f32 %v560_v61, %v558_v53  ;;  %v648_v2 = vadd.f32 %v647_v63, %v645_v62 }
 0x32f   : > { %1164 = vmatmul.mubr.msk.f32.vlgmr.msra.gmra.mrb[2].mxu1 %vm207_vm2, %v474_v0 }
 0x330   : > { %1242 = vmatpush3.bf16.msra.mxu1 %v1660_v5  ;;  %1185 = vmatprep.mubr.msk.f32.mxu1 %vm1475_vm1, %v1476_v7 }
 0x331   : > { %1243 = vmatprep.subr.bf16.mxu1 %v1474_v4 }
 0x334   : > { %1245 = vmatpush3.bf16.msra.mxu1 %v1668_v14 }
 0x335   : > { %1252 = vmatprep.subr.bf16.mxu1 %v1474_v4 }
 0x402   : > { %v546_v6 = vpop.f32.mrb[2].mxu1 }
 0x403   : > { %v550_v8 = vadd.f32 %v1041_v3, %v546_v6  ;;  %v1165_v9 = vpop.f32.mrb[3].mxu1 }
 0x405   : > { %1329 = vtanh.f32 %v550_v8 }
 0x40f   : > { %v1330_v10 = vpop.eup %1329 }
 0x410   : > { %1043 = vst.msk [vmem:[%s1655_s17 + $0x18] sm:$0xff] %vm207_vm2, %v1330_v10 }
 0x417   : > { %v1046_v11 = vld [vmem:[%s1655_s17 + $0x18] sm:$0xff] }
 0x418   : > { %v563_v12 = vmul.f32 0.3125, %v1046_v11  ;;  %v650_v13 = vmul.f32 0.9375, %v1046_v11  ;;  %v737_v16 = vmul.f32 -0.3125, %v1046_v11  ;;  %v825_v28 = vmul.f32 0.0625, %v1046_v11 }
 0x41a   : > { %v564_v17 = vadd.f32 %v563_v12, %v561_v1  ;;  %v651_v18 = vadd.f32 %v650_v13, %v648_v2  ;;  %v738_v19 = vadd.f32 %v737_v16, %v735_v15 }
 0x41c   : > { %1175 = vmatmul.mubr.msk.f32.vlgmr.msra.gmra.mrb[4].mxu0 %vm207_vm2, %v564_v17 }
 0x41d   : > { %1248 = vmatpush3.bf16.msra.mxu0 %v1660_v5  ;;  %1196 = vmatprep.mubr.msk.f32.mxu0 %vm1475_vm1, %v1476_v7 }
 0x41e   : > { %1249 = vmatprep.subr.bf16.mxu0 %v1474_v4 }
 0x421   : > { %1251 = vmatpush3.bf16.msra.mxu0 %v1668_v14 }
 0x4ef   : > { %v636_v21 = vpop.f32.mrb[4].mxu0 }
 0x4f0   : > { %v640_v22 = vadd.f32 %v1047_v20, %v636_v21  ;;  %v1176_v23 = vpop.f32.mrb[5].mxu0 }
 0x4f2   : > { %1331 = vtanh.f32 %v640_v22 }
 0x4fc   : > { %v1332_v24 = vpop.eup %1331 }
 0x4fd   : > { %1049 = vst.msk [vmem:[%s1655_s17 + $0x20] sm:$0xff] %vm207_vm2, %v1332_v24 }
 0x504   : > { %v1071_v25 = vld [vmem:[%s1655_s17 + $0x20] sm:$0xff] }
 0x505   : > { %918 = vst.msk [vmem:[#allocation2] sm:$0xff] %vm207_vm2, %v1071_v25  ;;  %v653_v26 = vmul.f32 0.3125, %v1071_v25  ;;  %v740_v27 = vmul.f32 0.9375, %v1071_v25  ;;  %v827_v29 = vmul.f32 -0.3125, %v1071_v25 }
 0x507   : > { %v654_v30 = vadd.f32 %v653_v26, %v651_v18  ;;  %v741_v31 = vadd.f32 %v740_v27, %v738_v19  ;;  %v828_v32 = vadd.f32 %v827_v29, %v825_v28 }
 0x509   : > { %1186 = vmatmul.mubr.msk.f32.vlgmr.msra.gmra.mrb[4].mxu1 %vm207_vm2, %v654_v30 }
 0x50a   : > { %1254 = vmatpush3.bf16.msra.mxu1 %v1660_v5  ;;  %1207 = vmatprep.mubr.msk.f32.mxu1 %vm1475_vm1, %v1476_v7 }
 0x50b   : > { %1255 = vmatprep.subr.bf16.mxu1 %v1474_v4 }
 0x50e   : > { %1257 = vmatpush3.bf16.msra.mxu1 %v1668_v14  ;;  %v1061_v14 = vld [vmem:[%s1645_s3 + $0x30] sm:$0xff] }
 0x5dc   : > { %v726_v34 = vpop.f32.mrb[4].mxu1 }
 0x5dd   : > { %v730_v35 = vadd.f32 %v1054_v33, %v726_v34  ;;  %v1187_v36 = vpop.f32.mrb[5].mxu1 }
 0x5df   : > { %1333 = vtanh.f32 %v730_v35 }
 0x5e9   : > { %v1334_v37 = vpop.eup %1333 }
 0x5ea   : > { %1056 = vst.msk [vmem:[%s1655_s17 + $0x28] sm:$0xff] %vm207_vm2, %v1334_v37 }
 0x5f1   : > { %v1072_v38 = vld [vmem:[%s1655_s17 + $0x28] sm:$0xff] }
 0x5f2   : > { %919 = vst.msk [vmem:[#allocation2 + $0x8] sm:$0xff] %vm207_vm2, %v1072_v38  ;;  %v743_v5 = vmul.f32 0.3125, %v1072_v38  ;;  %v830_v7 = vmul.f32 0.9375, %v1072_v38 }
 0x5f4   : > { %v744_v4 = vadd.f32 %v743_v5, %v741_v31  ;;  %v831_v39 = vadd.f32 %v830_v7, %v828_v32 }
 0x5f6   : > { %1197 = vmatmul.mubr.msk.f32.vlgmr.msra.gmra.mrb[6].mxu0 %vm207_vm2, %v744_v4 }
 0x6c9   : > { %v816_v40 = vpop.f32.mrb[6].mxu0 }
 0x6ca   : > { %v820_v41 = vadd.f32 %v1061_v14, %v816_v40  ;;  %v1198_v42 = vpop.f32.mrb[7].mxu0 }
 0x6cc   : > { %1335 = vtanh.f32 %v820_v41 }
 0x6d6   : > { %v1336_v43 = vpop.eup %1335 }
 0x6d7   : > { %1063 = vst.msk [vmem:[%s1655_s17 + $0x30] sm:$0xff] %vm207_vm2, %v1336_v43 }
 0x6de   : > { %v1073_v44 = vld [vmem:[%s1655_s17 + $0x30] sm:$0xff] }
 0x6df   : > { %920 = vst.msk [vmem:[#allocation2 + $0x10] sm:$0xff] %vm207_vm2, %v1073_v44  ;;  %v833_v45 = vmul.f32 0.3125, %v1073_v44 }
 0x6e1   : > { %v834_v46 = vadd.f32 %v833_v45, %v831_v39 }
 0x6e3   : > { %1208 = vmatmul.mubr.msk.f32.vlgmr.msra.gmra.mrb[6].mxu1 %vm207_vm2, %v834_v46 }
 0x7b6   : > { %v906_v48 = vpop.f32.mrb[6].mxu1 }
 0x7b7   : > { %v910_v49 = vadd.f32 %v1068_v47, %v906_v48  ;;  %v1209_v50 = vpop.f32.mrb[7].mxu1 }
 0x7b9   : > { %1337 = vtanh.f32 %v910_v49 }
 0x7c3   : > { %v1338_v51 = vpop.eup %1337 }
 0x7c4   : > { %1070 = vst.msk [vmem:[%s1655_s17 + $0x38] sm:$0xff] %vm207_vm2, %v1338_v51 }
 0x7c5   : > { %1410 = shalt.err (!%p1407_p10)
}
 0x7c6   : > { %s1411_s20 = scalar_lea.hbm %s1756_s22, 1024  ;;  %s1415_s25 = scalar_lea.hbm %s1808_s2, 2048 }
 0x7c7   : > { %p1412_p1 = scmp.ne.s32.totalorder %s1756_s22, %s1411_s20  ;;  %p1416_p12 = scmp.lt.u32.totalorder %s1756_s22, %s1808_s2 }
 0x7c8   : > { %p1417_p2 = scmp.lt.u32.totalorder %s1415_s25, %s1411_s20  ;;  %p1419_p6 = scmp.lt.u32.totalorder %s1411_s20, %s1756_s22 }
 0x7c9   : > { %p1413_p0 = pnand %p1412_p1, %p1590_p11 }
 0x7ca   : > { %p1418_p4 = por %p1417_p2, %p1416_p12 }
 0x7cb   : > { %p1414_p5 = pneg %p1413_p0 }
 0x7cc   : > { %p1420_p8 = por %p1419_p6, %p1418_p4 }
 0x7ce   : > { %p1421_p9 = pnand %p1420_p8, %p1414_p5 }
 0x7d0   : > { %1424 = shalt.err (!%p1421_p9)
}
 0x7d1   : > { %s1478_s30 = smov 128   ;;  %s1479_s3 = smov 8   ;;  %v1074_v52 = vld [vmem:[%s1655_s17 + $0x38] sm:$0xff] }
 0x7d2   : > { %1264 = dma.vmem_to_hbm [thread:$0]  (%p1590_p11), %s1758_s4, 1024, %s1756_s22, %s923_s23, %s1478_s30, %s1478_s30, %s1479_s3   ;;  %921 = vst.msk [vmem:[#allocation2 + $0x18] sm:$0xff] %vm207_vm2, %v1074_v52 }
 0x7d3 PF: > { %s951_s15 = sand.u32 1, %s1455_s9   ;;  %p1824_p13 = scmp.ne.s32.totalorder %s1813_s16, 0 }
 0x7d4   : > { %p1825_p3 = scmp.ge.s32.totalorder %s1467_s12, 2  ;;  %s952_s5 = scalar_lea.sflag [#allocation5], %s951_s15 }
 0x7d6   : > { %p1275_p7 = pnand %p1825_p3, %p1824_p13 }
 0x7d8   : > { %1450 = dma.done.wait (!%p1275_p7), %s952_s5, 1024  }
 0x7d9   : > { %1452 = vsyncadd (!%p1275_p7), %s952_s5, 4294966272  ;;  %p16_p11 = scmp.ge.s32.totalorder %s1552_s21, 4   ;;  %s1826_s9 = smov %s1459_s10 }
 0x7da   : > { %s1827_s10 = smov %s1463_s11  ;;  %s1828_s11 = smov %s1586_s8 }
 0x7db   : > { %s1829_s12 = smov %s1552_s21  ;;  %18 = sbr.rel (!%p16_p11) target bundleno = 6 (0x6), region = 98 }
 0x7e2   :  { %957 = vsyncpa [#allocation4], 1 }
 0x7e3   :  { %959 = vsyncpa [#allocation4 + $0x1], 1 }
 0x7e4   :  { %960 = vsyncpa [#allocation7], 1 }
 0x7e5   :  { %961 = vsyncpa [#allocation5], 1 }
 0x7e6   :  { %963 = vsyncpa [#allocation5 + $0x1], 1 }

</bundles_post_ra>
